<compile_context>
chip_gen: v5e
topology: v5e:2x2
jax: 0.10.0
libtpu: 0.0.40
codegen_flags: <defaults>
</compile_context>

<pallas_src>
import jax
import jax.numpy as jnp
from jax.experimental import pallas as pl
from jax.experimental.pallas import tpu as pltpu

_LANE = 128     # lane width (last dim tile)
_SUBLANE = 8    # sublane width (second-to-last dim tile)


def _round_up(n, m):
    return ((n + m - 1) // m) * m


def actor_kernel(x_ref, w1_ref, b1_ref, w2_ref, b2_ref, o_ref):
    # fc1 + ReLU.  f32 MXU matmul with f32 accumulation; K = input_dim is
    # tiny and unaligned — Mosaic pads the contraction internally.
    h = jnp.dot(x_ref[...], w1_ref[...], preferred_element_type=jnp.float32)
    h = jnp.maximum(h + b1_ref[...], 0.0)

    # fc2 -> narrow logits (TB, out_dim).  No lane padding, so no mask needed
    # before the softmax reductions.
    logits = jnp.dot(h, w2_ref[...], preferred_element_type=jnp.float32)
    logits = logits + b2_ref[...]

    # Numerically stable softmax along the (narrow) lane axis.
    m = jnp.max(logits, axis=-1, keepdims=True)
    e = jnp.exp(logits - m)
    denom = jnp.sum(e, axis=-1, keepdims=True)
    inv = pl.reciprocal(denom)        # exact; cost hidden (HBM-bound kernel)
    o_ref[...] = (e * inv).astype(o_ref.dtype)


def actor_forward(x, w1, b1, w2, b2, *, block_batch=2048):
    """x: (B, in_dim); w1: (in_dim, hidden); b1: (1, hidden) or (hidden,);
    w2: (hidden, out_dim); b2: (1, out_dim) or (out_dim,).
    Returns softmax(relu(x @ w1 + b1) @ w2 + b2) of shape (B, out_dim), f32."""
    B, in_dim = x.shape
    hidden = w1.shape[1]
    out_dim = w2.shape[1]

    # Hidden dim padded once to a full lane tile: costs nothing (weights are
    # tiny, DMA'd once, VMEM-resident) and keeps the intermediate h lane-dense.
    H = _round_up(hidden, _LANE)

    # Batch tiling: no batch-pad copy of x.  A ragged last block is fine —
    # out-of-range output rows are masked on store.
    TB = min(block_batch, _round_up(B, _SUBLANE))
    if B >= 16 and pl.cdiv(B, TB) < 2:
        # Ensure >=2 grid steps so the "parallel" axis can shard across the
        # two v7x TensorCores (no effect on single-TC v5e/v6e).
        TB = _round_up(pl.cdiv(B, 2), _SUBLANE)
    if pl.cdiv(B, TB) == 1:
        TB = B                      # exact single block, no ragged tail
    grid = (pl.cdiv(B, TB),)

    f32 = jnp.float32
    w1_p = jnp.pad(w1.astype(f32), ((0, 0), (0, H - hidden)))
    b1_p = jnp.pad(b1.astype(f32).reshape(1, hidden), ((0, 0), (0, H - hidden)))
    w2_p = jnp.pad(w2.astype(f32), ((0, H - hidden), (0, 0)))
    b2_p = b2.astype(f32).reshape(1, out_dim)

    return pl.pallas_call(
        actor_kernel,
        out_shape=jax.ShapeDtypeStruct((B, out_dim), f32),
        grid=grid,
        in_specs=[
            pl.BlockSpec((TB, in_dim), lambda i: (i, 0)),   # x: batch-tiled, natural lanes
            pl.BlockSpec((in_dim, H), lambda i: (0, 0)),    # w1: VMEM-resident
            pl.BlockSpec((1, H), lambda i: (0, 0)),         # b1: VMEM-resident
            pl.BlockSpec((H, out_dim), lambda i: (0, 0)),   # w2: VMEM-resident, narrow out
            pl.BlockSpec((1, out_dim), lambda i: (0, 0)),   # b2: VMEM-resident
        ],
        out_specs=pl.BlockSpec((TB, out_dim), lambda i: (i, 0)),
        compiler_params=pltpu.CompilerParams(
            dimension_semantics=("parallel",)),
    )(x.astype(f32), w1_p, b1_p, w2_p, b2_p)


def xavier_uniform(key, fan_in, fan_out):
    # Matches torch.nn.init.xavier_uniform_ (gain=1): U(-a, a), a = sqrt(6/(fan_in+fan_out))
    a = jnp.sqrt(6.0 / (fan_in + fan_out))
    return jax.random.uniform(key, (fan_in, fan_out), jnp.float32, -a, a)


if __name__ == "__main__":
    # Small shapes consistent with the module (CartPole-ish Actor).
    batch, input_dim, hidden_dim, output_dim = 2, 4, 32, 2

    key = jax.random.PRNGKey(0)
    k_x, k_w1, k_w2 = jax.random.split(key, 3)

    x = jax.random.normal(k_x, (batch, input_dim), jnp.float32)

    # Deterministic Xavier-uniform weights, zero biases (as in init_weights()).
    w1 = xavier_uniform(k_w1, input_dim, hidden_dim)   # (in, hidden)
    b1 = jnp.zeros((1, hidden_dim), jnp.float32)
    w2 = xavier_uniform(k_w2, hidden_dim, output_dim)  # (hidden, out)
    b2 = jnp.zeros((1, output_dim), jnp.float32)

    out = actor_forward(x, w1, b1, w2, b2)
    out = jax.block_until_ready(out)

    # Reference check in plain f32 JAX.
    h_ref = jnp.maximum(x @ w1 + b1, 0.0)
    logits_ref = h_ref @ w2 + b2
    ref = jax.nn.softmax(logits_ref, axis=-1)

    assert out.shape == (batch, output_dim)
    assert jnp.allclose(out, ref, atol=2e-2, rtol=2e-2), "mismatch vs reference"
    assert jnp.allclose(jnp.sum(out, axis=-1), 1.0, atol=1e-3), \
        "softmax rows must sum to ~1"

    print("KERNEL_OK")
</pallas_src>

<mosaic_0001>
module attributes {stable_mosaic.version = 11 : i64} {
  func.func @actor_kernel(%arg0: i32, %arg1: memref<2x4xf32, #tpu.memory_space<vmem>>, %arg2: memref<4x128xf32, #tpu.memory_space<vmem>>, %arg3: memref<1x128xf32, #tpu.memory_space<vmem>>, %arg4: memref<128x2xf32, #tpu.memory_space<vmem>>, %arg5: memref<1x2xf32, #tpu.memory_space<vmem>>, %arg6: memref<2x2xf32, #tpu.memory_space<vmem>>) attributes {dimension_semantics = [#tpu.dimension_semantics<parallel>], iteration_bounds = array<i64: 1>, scalar_prefetch = 0 : i64, scratch_operands = 0 : i64, tpu.core_type = #tpu.core_type<tc>, window_params = [{transform_indices = @transform_0, window_bounds = array<i64: 2, 4>}, {pipeline_mode = #tpu.pipeline_mode<synchronous>, transform_indices = @transform_1, window_bounds = array<i64: 4, 128>}, {pipeline_mode = #tpu.pipeline_mode<synchronous>, transform_indices = @transform_2, window_bounds = array<i64: 1, 128>}, {pipeline_mode = #tpu.pipeline_mode<synchronous>, transform_indices = @transform_3, window_bounds = array<i64: 128, 2>}, {pipeline_mode = #tpu.pipeline_mode<synchronous>, transform_indices = @transform_4, window_bounds = array<i64: 1, 2>}, {transform_indices = @transform_5, window_bounds = array<i64: 2, 2>}]} {
    %c0 = arith.constant 0 : index
    %c0_0 = arith.constant 0 : index
    %0 = vector.load %arg1[%c0, %c0_0] : memref<2x4xf32, #tpu.memory_space<vmem>>, vector<2x4xf32>
    %c0_1 = arith.constant 0 : index
    %c0_2 = arith.constant 0 : index
    %1 = vector.load %arg2[%c0_1, %c0_2] : memref<4x128xf32, #tpu.memory_space<vmem>>, vector<4x128xf32>
    %cst = arith.constant dense<0.000000e+00> : vector<2x128xf32>
    %2 = tpu.matmul %0, %1, %cst {dimension_numbers = #tpu.dot_dimension_numbers<[1], [0], [0], [1], [0, 0, 1, 1], [], []>} : vector<2x4xf32>, vector<4x128xf32>, vector<2x128xf32> -> vector<2x128xf32>
    %c0_3 = arith.constant 0 : index
    %c0_4 = arith.constant 0 : index
    %3 = vector.load %arg3[%c0_3, %c0_4] : memref<1x128xf32, #tpu.memory_space<vmem>>, vector<1x128xf32>
    %4 = vector.broadcast %3 : vector<1x128xf32> to vector<2x128xf32>
    %5 = arith.addf %2, %4 : vector<2x128xf32>
    %cst_5 = arith.constant 0.000000e+00 : f32
    %6 = vector.broadcast %cst_5 : f32 to vector<2x128xf32>
    %7 = arith.maximumf %5, %6 : vector<2x128xf32>
    %c0_6 = arith.constant 0 : index
    %c0_7 = arith.constant 0 : index
    %8 = vector.load %arg4[%c0_6, %c0_7] : memref<128x2xf32, #tpu.memory_space<vmem>>, vector<128x2xf32>
    %cst_8 = arith.constant dense<0.000000e+00> : vector<2x2xf32>
    %9 = tpu.matmul %7, %8, %cst_8 {dimension_numbers = #tpu.dot_dimension_numbers<[1], [0], [0], [1], [0, 0, 1, 1], [], []>} : vector<2x128xf32>, vector<128x2xf32>, vector<2x2xf32> -> vector<2x2xf32>
    %c0_9 = arith.constant 0 : index
    %c0_10 = arith.constant 0 : index
    %10 = vector.load %arg5[%c0_9, %c0_10] : memref<1x2xf32, #tpu.memory_space<vmem>>, vector<1x2xf32>
    %11 = vector.broadcast %10 : vector<1x2xf32> to vector<2x2xf32>
    %12 = arith.addf %9, %11 : vector<2x2xf32>
    %cst_11 = arith.constant dense<0xFF800000> : vector<2xf32>
    %13 = vector.multi_reduction <maximumf>, %12, %cst_11 [1] : vector<2x2xf32> to vector<2xf32>
    %14 = vector.shape_cast %13 : vector<2xf32> to vector<2x1xf32>
    %15 = vector.broadcast %14 : vector<2x1xf32> to vector<2x2xf32>
    %16 = arith.subf %12, %15 : vector<2x2xf32>
    %17 = math.exp %16 : vector<2x2xf32>
    %cst_12 = arith.constant dense<0.000000e+00> : vector<2xf32>
    %18 = vector.multi_reduction <add>, %17, %cst_12 [1] : vector<2x2xf32> to vector<2xf32>
    %19 = vector.shape_cast %18 : vector<2xf32> to vector<2x1xf32>
    %20 = tpu.reciprocal %19 : vector<2x1xf32> -> vector<2x1xf32>
    %21 = vector.broadcast %20 : vector<2x1xf32> to vector<2x2xf32>
    %22 = arith.mulf %17, %21 : vector<2x2xf32>
    %c0_13 = arith.constant 0 : index
    %c0_14 = arith.constant 0 : index
    %23 = vector.load %arg6[%c0_13, %c0_14] : memref<2x2xf32, #tpu.memory_space<vmem>>, vector<2x2xf32>
    tpu.vector_store %arg6[%c0_13, %c0_14], %22 {strides = array<i32>} : memref<2x2xf32, #tpu.memory_space<vmem>>, vector<2x2xf32>,
    return
  }
  func.func @transform_0(%arg0: i32) -> (i32, i32) {
    %c0_i32 = arith.constant 0 : i32
    %c0_i32_0 = arith.constant 0 : i32
    return %arg0, %c0_i32 : i32, i32
  }
  func.func @transform_1(%arg0: i32) -> (i32, i32) {
    %c0_i32 = arith.constant 0 : i32
    %c0_i32_0 = arith.constant 0 : i32
    %c0_i32_1 = arith.constant 0 : i32
    return %c0_i32, %c0_i32_0 : i32, i32
  }
  func.func @transform_2(%arg0: i32) -> (i32, i32) {
    %c0_i32 = arith.constant 0 : i32
    %c0_i32_0 = arith.constant 0 : i32
    %c0_i32_1 = arith.constant 0 : i32
    return %c0_i32, %c0_i32_0 : i32, i32
  }
  func.func @transform_3(%arg0: i32) -> (i32, i32) {
    %c0_i32 = arith.constant 0 : i32
    %c0_i32_0 = arith.constant 0 : i32
    %c0_i32_1 = arith.constant 0 : i32
    return %c0_i32, %c0_i32_0 : i32, i32
  }
  func.func @transform_4(%arg0: i32) -> (i32, i32) {
    %c0_i32 = arith.constant 0 : i32
    %c0_i32_0 = arith.constant 0 : i32
    %c0_i32_1 = arith.constant 0 : i32
    return %c0_i32, %c0_i32_0 : i32, i32
  }
  func.func @transform_5(%arg0: i32) -> (i32, i32) {
    %c0_i32 = arith.constant 0 : i32
    %c0_i32_0 = arith.constant 0 : i32
    return %arg0, %c0_i32 : i32, i32
  }
}

</mosaic_0001>

<bundles_post_ra>
// kernel: tpu_custom_call.1
= control target key start
LH: loop header
LB: loop body
LE: loop exit
PB: predicated region body
PF: predicated region fallthrough
CT: control target
= control target key end

     0   :  { %vm31_vm0 = vcmask 1043456   ;;  %vm27_vm1 = vcmask 31744   ;;  %s270_s0 = inlined_call_operand.vmem [shape: f32[2,4], index: 0, kind: input, shape index: {}]   ;;  %s271_s1 = inlined_call_operand.vmem [shape: f32[4,128], index: 1, kind: input, shape index: {}]   ;;  %s272_s2 = inlined_call_operand.vmem [shape: f32[1,128], index: 2, kind: input, shape index: {}]   ;;  %s273_s3 = inlined_call_operand.vmem [shape: f32[128,2], index: 3, kind: input, shape index: {}]   ;;  %s274_s4 = inlined_call_operand.vmem [shape: f32[1,2], index: 4, kind: input, shape index: {}]   ;;  %s275_s5 = inlined_call_operand.hbm [shape: f32[2,2], index: 5, kind: output, shape index: {}]  }
   0x1   :  { %v22_v0 = vld [vmem:[%s271_s1] sm:$0xf]  ;;  %v71_v2 = vld [vmem:[%s273_s3 + $0x78] sm:$0xff]  ;;  %v70_v3 = vld [vmem:[%s273_s3 + $0x70] sm:$0xff] }
   0x2   :  { %v21_v1 = vld [vmem:[%s270_s0] sm:$0x3]  ;;  %138 = vmatpush.msk.msra.mxu0 %vm31_vm0, %v22_v0  ;;  %76 = vmatpush.msra.mxu1 %v71_v2  ;;  %v69_v4 = vld [vmem:[%s273_s3 + $0x68] sm:$0xff] }
   0x3   :  { %139 = vmatmul.msk.f32.vlgmr.msra.gmra.mxu0 %vm27_vm1, %v21_v1  ;;  %v68_v5 = vld [vmem:[%s273_s3 + $0x60] sm:$0xff] }
   0x4   :  { %77 = vmatpush.msra.mxu1 %v70_v3 }
   0x6   :  { %78 = vmatpush.msra.mxu1 %v69_v4 }
   0x7   :  { %10 = vsyncpa [#allocation3], 0  ;;  %v67_v6 = vld [vmem:[%s273_s3 + $0x58] sm:$0xff]  ;;  %v66_v7 = vld [vmem:[%s273_s3 + $0x50] sm:$0xff]  ;;  %vm96_vm2 = vcmask 9216   ;;  %s129_s30 = sshll.u32 %s275_s5, 4  ;;  %s130_s30 = int_to_ptr.hbm [resolvable:$true] %s129_s30 }
   0x8   :  { %79 = vmatpush.msra.mxu1 %v68_v5  ;;  %v65_v8 = vld [vmem:[%s273_s3 + $0x48] sm:$0xff]  ;;  %v64_v9 = vld [vmem:[%s273_s3 + $0x40] sm:$0xff]  ;;  %v63_v10 = vld [vmem:[%s273_s3 + $0x38] sm:$0xff] }
   0x9   :  { %v62_v11 = vld [vmem:[%s273_s3 + $0x30] sm:$0xff]  ;;  %v61_v12 = vld [vmem:[%s273_s3 + $0x28] sm:$0xff]  ;;  %v60_v13 = vld [vmem:[%s273_s3 + $0x20] sm:$0xff] }
   0xa   :  { %80 = vmatpush.msra.mxu1 %v67_v6  ;;  %v59_v14 = vld [vmem:[%s273_s3 + $0x18] sm:$0xff]  ;;  %v58_v15 = vld [vmem:[%s273_s3 + $0x10] sm:$0xff]  ;;  %v57_v16 = vld [vmem:[%s273_s3 + $0x8] sm:$0xff] }
   0xb   :  { %v56_v17 = vld [vmem:[%s273_s3] sm:$0xff] }
   0xc   :  { %81 = vmatpush.msra.mxu1 %v66_v7  ;;  %v141_v18 = vld [vmem:[%s272_s2] ss:$0 sm:$0xff]  ;;  %s173_s2 = smov [#allocation2]  }
   0xd   :  { %v142_v22 = vld [vmem:[%s274_s4] ss:$0 sm:$0xff]  ;;  %s127_s3 = sshll.u32 %s173_s2, 4  ;;  %s128_s3 = int_to_ptr.vmem [resolvable:$true] %s127_s3 }
   0xe   :  { %82 = vmatpush.msra.mxu1 %v65_v8 }
  0x10   :  { %83 = vmatpush.msra.mxu1 %v64_v9 }
  0x12   :  { %84 = vmatpush.msra.mxu1 %v63_v10 }
  0x14   :  { %85 = vmatpush.msra.mxu1 %v62_v11 }
  0x16   :  { %86 = vmatpush.msra.mxu1 %v61_v12 }
  0x18   :  { %87 = vmatpush.msra.mxu1 %v60_v13 }
  0x1a   :  { %88 = vmatpush.msra.mxu1 %v59_v14 }
  0x1c   :  { %89 = vmatpush.msra.mxu1 %v58_v15 }
  0x1e   :  { %90 = vmatpush.msra.mxu1 %v57_v16 }
  0x20   :  { %91 = vmatpush.msra.mxu1 %v56_v17 }
  0x80   :  { %v52_v19 = vpop.f32.mrf.mxu0 }
  0x81   :  { %v53_v20 = vadd.f32 %v141_v18, %v52_v19 }
  0x83   :  { %v55_v21 = vmax.f32 %v53_v20, 0.0 }
  0x85   :  { %92 = vmatmul.f32.vlgmr.msra.gmra.mxu1 %v55_v21 }
 0x102   :  { %v93_v23 = vpop.f32.mrf.mxu1 }
 0x103   :  { %v94_v24 = vadd.f32 %v142_v22, %v93_v23 }
 0x105   :  { %v97_v25 = vsel %vm96_vm2, %v94_v24, -inf }
 0x106   :  { %98 = vmax.xlane.f32.xlu0 %v97_v25 }
 0x179   :  { %v99_v26 = vpop.xlane.xlu0 %98 }
 0x17a   :  { %v100_v27 = vsub.f32 %v94_v24, %v99_v26 }
 0x17c   :  { %v101_v28 = vmul.f32 1.442695, %v100_v27 }
 0x17e   :  { %143 = vpow2.f32 %v101_v28 }
 0x184   :  { %v144_v29 = vpop.eup %143 }
 0x185   :  { %v103_v30 = vsel %vm96_vm2, %v144_v29, 0.0 }
 0x186   :  { %104 = vadd.xlane.f32.xlu0 %v103_v30 }
 0x1f9   :  { %v105_v31 = vpop.xlane.xlu0 %104 }
 0x1fa   :  { %145 = vrcp.f32 %v105_v31  ;;  %v117_v35 = vand.u32 2147483648, %v105_v31  ;;  %v115_v37 = vand.u32 2147483647, %v105_v31  ;;  %vm111_vm4 = vweird.f32 %v105_v31 }
 0x1fc   :  { %v118_v39 = vor.u32 1.1754944e-38, %v117_v35  ;;  %vm116_vm6 = vcmp.eq.f32.partialorder %v115_v37, 8.507059e+37 }
 0x200   :  { %v146_v32 = vpop.eup %145 }
 0x201   :  { %v107_v33 = vmul.f32 %v146_v32, %v105_v31  ;;  %vm112_vm3 = vweird.f32 %v146_v32 }
 0x202   :  { %vm113_vm5 = vmor %vm111_vm4, %vm112_vm3 }
 0x203   :  { %v108_v34 = vsub.f32 1.0, %v107_v33 }
 0x205   :  { %v109_v36 = vmul.f32 %v146_v32, %v108_v34 }
 0x207   :  { %v110_v38 = vadd.f32 %v146_v32, %v109_v36 }
 0x209   :  { %v114_v40 = vsel %vm113_vm5, %v146_v32, %v110_v38 }
 0x20a   :  { %v119_v41 = vsel %vm116_vm6, %v118_v39, %v114_v40 }
 0x20b   :  { %v120_v42 = vmul.f32 %v144_v29, %v119_v41 }
 0x20d   :  { %121 = vst.msk [vmem:[#allocation2] sm:$0x3] %vm96_vm2, %v120_v42 }
 0x20e   :  { %132 = dma.vmem_to_hbm [thread:$0]  %s128_s3, 32, %s130_s30, [#allocation3]  }
 0x20f   :  { %171 = dma.done.wait [#allocation3], 32  }
 0x210   :  { %172 = vsyncadd [#allocation3], 4294967264 }
 0x211   :  { %137 = vsyncpa [#allocation3], 1 }

</bundles_post_ra>
